<compile_context>
chip_gen: v7x
topology: tpu7x:2x2x1
jax: 0.10.0
libtpu: 0.0.40
codegen_flags: <defaults>
</compile_context>

<pallas_src>
import functools

import jax
import jax.numpy as jnp
from jax import lax
from jax.experimental import pallas as pl
from jax.experimental.pallas import tpu as pltpu


NUM_SPLITS = 2      # leading "parallel" grid axis (2 TCs on v7x; harmless serial elsewhere)
_OUT_SUB = 8        # per-split output slab is (8, 128): fully (8,128)-aligned stores
_OUT_LANES = 128


def label_smoothing_loss_kernel(pred_ref, tgt_ref, out_ref, acc_ref, *,
                                num_classes, smoothing, total_rows,
                                tile_rows, tiles_per_split):
    c = pl.program_id(0)            # split index (parallel)
    j = pl.program_id(1)            # row-tile index within split (reduction)
    nj = pl.num_programs(1)

    # Fresh raw-sum accumulator for this split.
    @pl.when(j == 0)
    def _():
        acc_ref[...] = jnp.zeros_like(acc_ref)

    x = pred_ref[...].astype(jnp.float32)                    # (TN, C) native dtype -> f32
    tn = x.shape[0]

    # Numerically-stable log-softmax pieces (no full logp / smoothed tensors).
    m = jnp.max(x, axis=-1, keepdims=True)                   # (TN, 1)
    z = x - m
    se = jnp.sum(jnp.exp(z), axis=-1, keepdims=True)         # (TN, 1)
    lse = jnp.log(se)                                        # (TN, 1)
    sum_z = jnp.sum(z, axis=-1, keepdims=True)               # (TN, 1)

    # Pick z at the target class via iota compare (scatter_ equivalent).
    col = lax.broadcasted_iota(jnp.int32, x.shape, 1)        # (TN, C)
    tgt = tgt_ref[...]                                       # (TN, 1) int32
    z_t = jnp.sum(jnp.where(col == tgt, z, 0.0), axis=-1, keepdims=True)  # (TN, 1)

    confidence = jnp.float32(1.0 - smoothing)
    off = jnp.float32(smoothing / (num_classes - 1))
    # sum_c(smoothed * logp) = off*(sum_z - C*lse) + (conf - off)*(z_t - lse)
    per_row = off * (sum_z - jnp.float32(num_classes) * lse) \
        + (confidence - off) * (z_t - lse)                   # (TN, 1)

    # Mask rows past N (partial last tile / clamped duplicate tiles).
    row_start = (c * tiles_per_split + j) * tile_rows
    rows = row_start + lax.broadcasted_iota(jnp.int32, (tn, 1), 0)
    per_row = jnp.where(rows < total_rows, per_row, 0.0)

    # Accumulate the RAW sum (single divide at the end -> better numerics).
    acc_ref[...] += jnp.sum(per_row, axis=0, keepdims=True)  # (1, 1)

    # Finalize: scale once and emit this split's partial into its own output slab.
    @pl.when(j == nj - 1)
    def _():
        scaled = acc_ref[...] * jnp.float32(-1.0 / total_rows)        # (1, 1)
        sub = lax.broadcasted_iota(jnp.int32, (_OUT_SUB, _OUT_LANES), 0)
        lane = lax.broadcasted_iota(jnp.int32, (_OUT_SUB, _OUT_LANES), 1)
        out_ref[...] = jnp.where((sub == 0) & (lane == 0), scaled, 0.0)


def label_smoothing_loss(pred, target, num_classes, smoothing=0.1, tile_rows=None):
    """pred: [N, C] float (any float dtype), target: [N] int class indices.

    Returns scalar f32 loss: -mean_n sum_c smoothed[n,c] * log_softmax(pred)[n,c].
    """
    N, C = pred.shape
    dtype_bytes = jnp.dtype(pred.dtype).itemsize
    # sublane packing: 8 rows for 4-byte, 16 for 2-byte, 32 for 1-byte dtypes
    sublane = max(8, 32 // max(1, dtype_bytes))

    if tile_rows is None:
        # Size the pred block to ~4 MiB (x2 for double-buffering stays well under the
        # 32 MiB default scoped VMEM on v6e/v7x, and far under v5e/v6e's 128 MiB).
        budget_bytes = 4 * 1024 * 1024
        t = budget_bytes // max(1, C * dtype_bytes)
        t = max(sublane, (t // sublane) * sublane)
        tile_rows = min(t, 2048)
    n_up = ((N + sublane - 1) // sublane) * sublane
    tile_rows = max(sublane, min(tile_rows, n_up))

    tiles_total = (N + tile_rows - 1) // tile_rows
    tiles_per_split = (tiles_total + NUM_SPLITS - 1) // NUM_SPLITS

    target2d = target.astype(jnp.int32).reshape(N, 1)

    def row_block(i, j):
        # Clamp so empty splits / overhang tiles re-read a valid block; the in-kernel
        # row mask zeroes their contribution.
        t = i * tiles_per_split + j
        return (jnp.minimum(t, tiles_total - 1), 0)

    kernel = functools.partial(
        label_smoothing_loss_kernel,
        num_classes=num_classes,
        smoothing=float(smoothing),
        total_rows=N,
        tile_rows=tile_rows,
        tiles_per_split=tiles_per_split,
    )

    cost = pl.CostEstimate(
        flops=6 * N * C,
        transcendentals=N * C + N,
        bytes_accessed=N * C * dtype_bytes + N * 4
        + NUM_SPLITS * _OUT_SUB * _OUT_LANES * 4,
    )

    out = pl.pallas_call(
        kernel,
        out_shape=jax.ShapeDtypeStruct((NUM_SPLITS * _OUT_SUB, _OUT_LANES), jnp.float32),
        grid_spec=pltpu.PrefetchScalarGridSpec(
            num_scalar_prefetch=0,
            grid=(NUM_SPLITS, tiles_per_split),
            in_specs=[
                pl.BlockSpec((tile_rows, C), row_block),   # pred row tile (native dtype)
                pl.BlockSpec((tile_rows, 1), row_block),   # target row tile
            ],
            # one (8,128) slab per split -> no cross-core accumulator race on v7x
            out_specs=pl.BlockSpec((_OUT_SUB, _OUT_LANES), lambda i, j: (i, 0)),
            scratch_shapes=[pltpu.VMEM((1, 1), jnp.float32)],   # raw-sum accumulator
        ),
        compiler_params=pltpu.CompilerParams(
            dimension_semantics=("parallel", "arbitrary"),
        ),
        cost_estimate=cost,
    )(pred, target2d)                                        # no wrapper upcast pass
    # Only [split*8, 0] lanes are non-zero; a plain sum yields the loss.
    return jnp.sum(out)


def _reference(pred, target, num_classes, smoothing):
    logp = jax.nn.log_softmax(pred.astype(jnp.float32), axis=-1)
    confidence = 1.0 - smoothing
    off = smoothing / (num_classes - 1)
    smoothed = jnp.full_like(logp, off).at[jnp.arange(pred.shape[0]), target].set(confidence)
    return -jnp.mean(jnp.sum(smoothed * logp, axis=-1))


if __name__ == "__main__":
    key = jax.random.PRNGKey(0)
    k1, k2 = jax.random.split(key)

    N, C = 16, 32          # batch of 16 samples, 32 classes
    smoothing = 0.1

    pred = jax.random.normal(k1, (N, C), dtype=jnp.float32)
    target = jax.random.randint(k2, (N,), 0, C, dtype=jnp.int32)

    loss = label_smoothing_loss(pred, target, num_classes=C, smoothing=smoothing)
    loss = jax.block_until_ready(loss)

    ref = _reference(pred, target, C, smoothing)
    assert jnp.allclose(loss, ref, rtol=1e-5, atol=1e-5), (loss, ref)

    print("KERNEL_OK")
</pallas_src>

<mosaic_0001>
module attributes {stable_mosaic.version = 11 : i64} {
  func.func @label_smoothing_loss_kernel(%arg0: i32, %arg1: i32, %arg2: memref<16x32xf32, #tpu.memory_space<vmem>>, %arg3: memref<16x1xi32, #tpu.memory_space<vmem>>, %arg4: memref<8x128xf32, #tpu.memory_space<vmem>>, %arg5: memref<1x1xf32, #tpu.memory_space<vmem>>) attributes {dimension_semantics = [#tpu.dimension_semantics<parallel>, #tpu.dimension_semantics<arbitrary>], iteration_bounds = array<i64: 2, 1>, scalar_prefetch = 0 : i64, scratch_operands = 1 : i64, tpu.core_type = #tpu.core_type<tc>, window_params = [{transform_indices = @transform_0, window_bounds = array<i64: 16, 32>}, {transform_indices = @transform_1, window_bounds = array<i64: 16, 1>}, {transform_indices = @transform_2, window_bounds = array<i64: 8, 128>}]} {
    %c0_i32 = arith.constant 0 : i32
    %0 = arith.cmpi eq, %arg1, %c0_i32 : i32
    %1 = arith.extui %0 : i1 to i32
    %c0_i32_0 = arith.constant 0 : i32
    %2 = arith.cmpi ne, %1, %c0_i32_0 : i32
    scf.if %2 {
      %cst_21 = arith.constant 0.000000e+00 : f32
      %50 = vector.broadcast %cst_21 : f32 to vector<1x1xf32>
      %c0_22 = arith.constant 0 : index
      %c0_23 = arith.constant 0 : index
      %51 = vector.load %arg5[%c0_22, %c0_23] : memref<1x1xf32, #tpu.memory_space<vmem>>, vector<1x1xf32>
      tpu.vector_store %arg5[%c0_22, %c0_23], %50 {strides = array<i32>} : memref<1x1xf32, #tpu.memory_space<vmem>>, vector<1x1xf32>,
    } else {
    }
    %c0 = arith.constant 0 : index
    %c0_1 = arith.constant 0 : index
    %3 = vector.load %arg2[%c0, %c0_1] : memref<16x32xf32, #tpu.memory_space<vmem>>, vector<16x32xf32>
    %cst = arith.constant dense<0xFF800000> : vector<16xf32>
    %4 = vector.multi_reduction <maximumf>, %3, %cst [1] : vector<16x32xf32> to vector<16xf32>
    %5 = vector.shape_cast %4 : vector<16xf32> to vector<16x1xf32>
    %6 = vector.broadcast %5 : vector<16x1xf32> to vector<16x32xf32>
    %7 = arith.subf %3, %6 : vector<16x32xf32>
    %8 = math.exp %7 : vector<16x32xf32>
    %cst_2 = arith.constant dense<0.000000e+00> : vector<16xf32>
    %9 = vector.multi_reduction <add>, %8, %cst_2 [1] : vector<16x32xf32> to vector<16xf32>
    %10 = vector.shape_cast %9 : vector<16xf32> to vector<16x1xf32>
    %11 = math.log %10 : vector<16x1xf32>
    %cst_3 = arith.constant dense<0.000000e+00> : vector<16xf32>
    %12 = vector.multi_reduction <add>, %7, %cst_3 [1] : vector<16x32xf32> to vector<16xf32>
    %13 = vector.shape_cast %12 : vector<16xf32> to vector<16x1xf32>
    %14 = tpu.iota {dimensions = array<i32: 1>} : vector<16x32xi32>
    %c0_4 = arith.constant 0 : index
    %c0_5 = arith.constant 0 : index
    %15 = vector.load %arg3[%c0_4, %c0_5] : memref<16x1xi32, #tpu.memory_space<vmem>>, vector<16x1xi32>
    %16 = vector.broadcast %15 : vector<16x1xi32> to vector<16x32xi32>
    %17 = arith.cmpi eq, %14, %16 : vector<16x32xi32>
    %cst_6 = arith.constant 0.000000e+00 : f32
    %18 = vector.broadcast %cst_6 : f32 to vector<16x32xf32>
    %19 = arith.select %17, %7, %18 : vector<16x32xi1>, vector<16x32xf32>
    %cst_7 = arith.constant dense<0.000000e+00> : vector<16xf32>
    %20 = vector.multi_reduction <add>, %19, %cst_7 [1] : vector<16x32xf32> to vector<16xf32>
    %21 = vector.shape_cast %20 : vector<16xf32> to vector<16x1xf32>
    %cst_8 = arith.constant 3.200000e+01 : f32
    %22 = vector.broadcast %cst_8 : f32 to vector<16x1xf32>
    %23 = arith.mulf %22, %11 : vector<16x1xf32>
    %24 = arith.subf %13, %23 : vector<16x1xf32>
    %cst_9 = arith.constant 0.0032258064 : f32
    %25 = vector.broadcast %cst_9 : f32 to vector<16x1xf32>
    %26 = arith.mulf %25, %24 : vector<16x1xf32>
    %cst_10 = arith.constant 0.899999976 : f32
    %cst_11 = arith.constant 0.0032258064 : f32
    %27 = arith.subf %cst_10, %cst_11 : f32
    %28 = arith.subf %21, %11 : vector<16x1xf32>
    %29 = vector.broadcast %27 : f32 to vector<16x1xf32>
    %30 = arith.mulf %29, %28 : vector<16x1xf32>
    %31 = arith.addf %26, %30 : vector<16x1xf32>
    %c1_i32 = arith.constant 1 : i32
    %32 = arith.muli %arg0, %c1_i32 : i32
    %33 = arith.addi %32, %arg1 : i32
    %c16_i32 = arith.constant 16 : i32
    %34 = arith.muli %33, %c16_i32 : i32
    %35 = tpu.iota {dimensions = array<i32: 0>} : vector<16x1xi32>
    %36 = vector.broadcast %34 : i32 to vector<16x1xi32>
    %37 = arith.addi %36, %35 : vector<16x1xi32>
    %c16_i32_12 = arith.constant 16 : i32
    %38 = vector.broadcast %c16_i32_12 : i32 to vector<16x1xi32>
    %39 = arith.cmpi slt, %37, %38 : vector<16x1xi32>
    %cst_13 = arith.constant 0.000000e+00 : f32
    %40 = vector.broadcast %cst_13 : f32 to vector<16x1xf32>
    %41 = arith.select %39, %31, %40 : vector<16x1xi1>, vector<16x1xf32>
    %c0_14 = arith.constant 0 : index
    %c0_15 = arith.constant 0 : index
    %42 = vector.load %arg5[%c0_14, %c0_15] : memref<1x1xf32, #tpu.memory_space<vmem>>, vector<1x1xf32>
    %cst_16 = arith.constant dense<0.000000e+00> : vector<1xf32>
    %43 = vector.multi_reduction <add>, %41, %cst_16 [0] : vector<16x1xf32> to vector<1xf32>
    %44 = vector.shape_cast %43 : vector<1xf32> to vector<1x1xf32>
    %45 = arith.addf %42, %44 : vector<1x1xf32>
    %c0_17 = arith.constant 0 : index
    %c0_18 = arith.constant 0 : index
    %46 = vector.load %arg5[%c0_17, %c0_18] : memref<1x1xf32, #tpu.memory_space<vmem>>, vector<1x1xf32>
    tpu.vector_store %arg5[%c0_17, %c0_18], %45 {strides = array<i32>} : memref<1x1xf32, #tpu.memory_space<vmem>>, vector<1x1xf32>,
    %c0_i32_19 = arith.constant 0 : i32
    %47 = arith.cmpi eq, %arg1, %c0_i32_19 : i32
    %48 = arith.extui %47 : i1 to i32
    %c0_i32_20 = arith.constant 0 : i32
    %49 = arith.cmpi ne, %48, %c0_i32_20 : i32
    scf.if %49 {
      %c0_21 = arith.constant 0 : index
      %c0_22 = arith.constant 0 : index
      %50 = vector.load %arg5[%c0_21, %c0_22] : memref<1x1xf32, #tpu.memory_space<vmem>>, vector<1x1xf32>
      %cst_23 = arith.constant -6.250000e-02 : f32
      %51 = vector.broadcast %cst_23 : f32 to vector<1x1xf32>
      %52 = arith.mulf %50, %51 : vector<1x1xf32>
      %53 = tpu.iota {dimensions = array<i32: 0>} : vector<8x128xi32>
      %54 = tpu.iota {dimensions = array<i32: 1>} : vector<8x128xi32>
      %c0_i32_24 = arith.constant 0 : i32
      %55 = vector.broadcast %c0_i32_24 : i32 to vector<8x128xi32>
      %56 = arith.cmpi eq, %53, %55 : vector<8x128xi32>
      %c0_i32_25 = arith.constant 0 : i32
      %57 = vector.broadcast %c0_i32_25 : i32 to vector<8x128xi32>
      %58 = arith.cmpi eq, %54, %57 : vector<8x128xi32>
      %59 = arith.andi %56, %58 : vector<8x128xi1>
      %cst_26 = arith.constant 0.000000e+00 : f32
      %60 = vector.shape_cast %52 : vector<1x1xf32> to vector<1x1xf32>
      %61 = vector.broadcast %60 : vector<1x1xf32> to vector<8x128xf32>
      %62 = vector.broadcast %cst_26 : f32 to vector<8x128xf32>
      %63 = arith.select %59, %61, %62 : vector<8x128xi1>, vector<8x128xf32>
      %c0_27 = arith.constant 0 : index
      %c0_28 = arith.constant 0 : index
      %64 = vector.load %arg4[%c0_27, %c0_28] : memref<8x128xf32, #tpu.memory_space<vmem>>, vector<8x128xf32>
      tpu.vector_store %arg4[%c0_27, %c0_28], %63 {strides = array<i32>} : memref<8x128xf32, #tpu.memory_space<vmem>>, vector<8x128xf32>,
    } else {
    }
    return
  }
  func.func @transform_0(%arg0: i32, %arg1: i32) -> (i32, i32) {
    %c1_i32 = arith.constant 1 : i32
    %0 = arith.muli %arg0, %c1_i32 : i32
    %1 = arith.addi %0, %arg1 : i32
    %c0_i32 = arith.constant 0 : i32
    %2 = arith.minsi %1, %c0_i32 : i32
    %c0_i32_0 = arith.constant 0 : i32
    %c0_i32_1 = arith.constant 0 : i32
    return %2, %c0_i32_0 : i32, i32
  }
  func.func @transform_1(%arg0: i32, %arg1: i32) -> (i32, i32) {
    %c1_i32 = arith.constant 1 : i32
    %0 = arith.muli %arg0, %c1_i32 : i32
    %1 = arith.addi %0, %arg1 : i32
    %c0_i32 = arith.constant 0 : i32
    %2 = arith.minsi %1, %c0_i32 : i32
    %c0_i32_0 = arith.constant 0 : i32
    %c0_i32_1 = arith.constant 0 : i32
    return %2, %c0_i32_0 : i32, i32
  }
  func.func @transform_2(%arg0: i32, %arg1: i32) -> (i32, i32) {
    %c0_i32 = arith.constant 0 : i32
    %c0_i32_0 = arith.constant 0 : i32
    return %arg0, %c0_i32 : i32, i32
  }
}

</mosaic_0001>

<bundles_post_ra>
// kernel: tpu_custom_call.1
= control target key start
LH: loop header
LB: loop body
LE: loop exit
PB: predicated region body
PF: predicated region fallthrough
CT: control target
= control target key end

     0   :  { %7 = vsyncpa [#allocation4], 0  ;;  %s735_s0 = inlined_call_operand.vmem [shape: f32[16,32], index: 0, kind: input, shape index: {}]   ;;  %s736_s1 = inlined_call_operand.vmem [shape: s32[16,1], index: 1, kind: input, shape index: {}]   ;;  %s737_s2 = inlined_call_operand.hbm [shape: f32[16,128], index: 2, kind: output, shape index: {}]  }
   0x1   :  { %9 = vsyncpa [#allocation4 + $0x1], 0  ;;  %s604_s9 = smov 0   ;;  %s606_s10 = smov 0  }
   0x2   :  { %s608_s11 = smov 0   ;;  %s610_s12 = smov 0  }
   0x3   :  { %s612_s13 = smov 0   ;;  %s614_s14 = smov 0  }
   0x4 LB: > { %s424_s15 = sadd.s32 4294967295, %s584_s14   ;;  %s425_s16 = sadd.s32 4294967294, %s584_s14   ;;  %s584_s14 = sphi %s614_s14, %s15_s14   ;;  %s580_s13 = sphi %s612_s13, %s744_s13   ;;  %s576_s12 = sphi %s610_s12, %s743_s12   ;;  %s572_s11 = sphi %s608_s11, %s742_s11   ;;  %s568_s10 = sphi %s606_s10, %s741_s10   ;;  %s564_s9 = sphi %s604_s9, %s740_s9  }
   0x5   : > { %s27_s17 = sadd.s32 1, %s580_s13  ;;  %s98_s18 = sadd.s32 1, %s572_s11 }
   0x6   : > { %p29_p0 = scmp.ge.s32.totalorder %s27_s17, 2  ;;  %p108_p1 = scmp.ne.s32.totalorder %s572_s11, %s568_s10 }
   0x7   : > { %p109_p2 = scmp.eq.s32.totalorder %s424_s15, 1  ;;  %p114_p3 = scmp.ne.s32.totalorder %s568_s10, %s564_s9 }
   0x8   : > { %s746_s17 = smov (%p29_p0, %s27_s17), 0  ;;  %p115_p5 = scmp.eq.s32.totalorder %s425_s16, 1 }
   0x9   : > { %p644_p4 = por %p109_p2, %p108_p1  ;;  %s95_s20 = ssub.s32 %s580_s13, %s746_s17 }
   0xa   : > { %p428_p6 = scmp.ge.s32.totalorder %s584_s14, 1  ;;  %p96_p7 = scmp.eq.s32.totalorder %s95_s20, 0 }
   0xb   : > { %p651_p8 = por %p115_p5, %p114_p3  ;;  %p163_p9 = scmp.lt.s32.totalorder %s584_s14, 3 }
   0xc   : > { %s657_s22 = scalar_select %p96_p7, %s572_s11, %s98_s18  }
   0xd   : > { %p164_p10 = pnand %p428_p6, %p163_p9 }
   0xe   : > { %p197_p11 = scmp.lt.s32.totalorder (!%p164_p10), %s576_s12, 0  ;;  %v586_v0 = vmov (!%p164_p10), 0   ;;  %vm228_vm0 = vcmask (!%p164_p10), 261120   ;;  %v257_v13 = vlaneseq (!%p164_p10)  ;;  %vm224_vm3 = vcmask (!%p164_p10), 0   ;;  %s434_s4 = sshll.u32 (!%p164_p10), %s576_s12, 4 }
   0xf   : > { %167 = sbr.rel (%p164_p10) target bundleno = 529 (0x211), region = 28  ;;  %496 = vset.pattern.permute.xlu1 (!%p164_p10), %v586_v0  ;;  %497 = vset.pattern.permute.xlu0 (!%p164_p10), %v586_v0  ;;  %v587_v27 = vmov (!%p164_p10), 0.0   ;;  %v294_v41 = vstv (!%p164_p10), %s434_s4  ;;  %s193_s5 = sand.u32 (!%p164_p10), 1, %s568_s10  }
  0x10   : > { %v670_v17 = vand.u32 (!%p164_p10), 127, %v257_v13  ;;  %225 = vst.msk [vmem:[#allocation2] sm:$0x1] (!%p164_p10), %vm224_vm3, %v587_v27  ;;  %v292_v35 = vshrl.u32 (!%p164_p10), %v257_v13, 7  ;;  %s429_s6 = sshll.u32 (!%p164_p10), %s193_s5, 3  ;;  %s436_s15 = sshll.u32 (!%p164_p10), %s576_s12, 7 }
  0x11   : > { %s195_s7 = scalar_lea.vmem (!%p164_p10), [#allocation3], %s429_s6  ;;  %s688_s20 = scalar_lea.hbm (!%p164_p10), %s737_s2, %s436_s15 }
  0x12   : > { %v293_v38 = vadd.s32 (!%p164_p10), 8, %v292_v35  ;;  %v295_v47 = vadd.s32 (!%p164_p10), %v294_v41, %v292_v35  ;;  %vm317_vm6 = vcmp.eq.s32.totalorder (!%p164_p10), %v292_v35, 0  ;;  %vm318_vm7 = vcmp.eq.s32.totalorder (!%p164_p10), %v670_v17, 0  ;;  %s345_s8 = sshll.u32 (!%p164_p10), %s195_s7, 4  ;;  %s690_s8 = int_to_ptr.vmem [resolvable:$true] %s345_s8 }
  0x13   : > { %vm319_vm8 = vmand (!%p164_p10), %vm317_vm6, %vm318_vm7 }
  0x14   : > { %v296_v48 = vadd.s32 (!%p164_p10), %v294_v41, %v293_v38  ;;  %vm297_vm4 = vcmp.lt.s32.totalorder (!%p164_p10), %v295_v47, 16 }
  0x16   : > { %s198_s23 = scalar_select %p197_p11, %s576_s12, 0  ;;  %vm298_vm5 = vcmp.lt.s32.totalorder %v296_v48, 16 }
  0x17   : > { %v301_v63 = vld [vmem:[#allocation2] sm:$0x1]  ;;  %s588_s12 = smov [#allocation3]  }
  0x18   : > { %s430_s24 = sshll.u32 %s198_s23, 1  ;;  %s332_s23 = scalar_lea.sflag [#allocation4], %s193_s5 }
  0x19   : > { %p200_p12 = scmp.lt.s32.totalorder %s430_s24, 1 }
  0x1b   : > { %s748_s24 = smov (!%p200_p12, %s430_s24), 1 }
  0x1c   : > { %s431_s25 = sshll.u32 %s748_s24, 3  ;;  %s506_s24 = scalar_lea.vmem %s690_s8, 128 }
  0x1d   : > { %s203_s28 = scalar_lea.vmem %s735_s0, %s431_s25  ;;  %s215_s3 = scalar_lea.vmem %s736_s1, %s431_s25 }
  0x1e   : > { %v226_v1 = vld [vmem:[%s203_s28] sm:$0xff]  ;;  %v227_v2 = vld [vmem:[%s203_s28 + $0x8] sm:$0xff]  ;;  %p507_p13 = scmp.ne.s32.totalorder %s690_s8, %s506_s24  ;;  %s510_s25 = sshll.u32 %s588_s12, 4  ;;  %s511_s25 = int_to_ptr.vmem [resolvable:$false] %s510_s25 }
  0x1f   : > { %v259_v3 = vld [vmem:[%s215_s3] sm:$0xff]  ;;  %v229_v4 = vsel %vm228_vm0, %v226_v1, -inf  ;;  %v260_v5 = vld [vmem:[%s215_s3 + $0x8] sm:$0xff]  ;;  %v232_v6 = vsel %vm228_vm0, %v227_v2, -inf  ;;  %s512_s26 = scalar_lea.vmem %s511_s25, 256  ;;  %p513_p2 = scmp.lt.s32.totalorder %s690_s8, %s511_s25 }
  0x20   : > { %262 = vperm.xlu1 %496, %v259_v3   ;;  %230 = vmax.xlane.f32.xlu0 %v229_v4  ;;  %p508_p0 = pnand %p507_p13, %p644_p4  ;;  %p514_p3 = scmp.lt.s32.totalorder %s512_s26, %s506_s24 }
  0x22   : > { %p509_p1 = pneg %p508_p0  ;;  %p515_p5 = por %p514_p3, %p513_p2 }
  0x24   : > { %265 = vperm.xlu1 %496, %v260_v5   ;;  %233 = vmax.xlane.f32.xlu0 %v232_v6  ;;  %p516_p6 = pnand %p515_p5, %p509_p1 }
  0x9f   : > { %v263_v16 = vpop.permute.xlu1 %262 }
  0xa0   : > { %vm267_vm1 = vcmp.eq.s32.totalorder %v670_v17, %v263_v16 }
  0xa3   : > { %v266_v21 = vpop.permute.xlu1 %265 }
  0xa4   : > { %vm268_vm2 = vcmp.eq.s32.totalorder %v670_v17, %v266_v21 }
  0xad   : > { %v231_v7 = vpop.xlane.xlu0 %230 }
  0xae   : > { %v235_v8 = vsub.f32 %v226_v1, %v231_v7 }
  0xb0   : > { %v237_v9 = vmul.f32 1.442695, %v235_v8  ;;  %v251_v19 = vsel %vm228_vm0, %v235_v8, 0.0  ;;  %v269_v23 = vsel %vm267_vm1, %v235_v8, 0.0 }
  0xb1   : > { %v234_v10 = vpop.xlane.xlu0 %233  ;;  %v271_v24 = vsel %vm228_vm0, %v269_v23, 0.0 }
  0xb2   : > { %498 = vpow2.f32 %v237_v9  ;;  %v236_v11 = vsub.f32 %v227_v2, %v234_v10  ;;  %v323_v2 = vsub.s32 0, %v292_v35 }
  0xb4   : > { %v239_v12 = vmul.f32 1.442695, %v236_v11  ;;  %v254_v22 = vsel %vm228_vm0, %v236_v11, 0.0  ;;  %v270_v25 = vsel %vm268_vm2, %v236_v11, 0.0 }
  0xb5   : > { %v274_v26 = vsel %vm228_vm0, %v270_v25, 0.0 }
  0xb6   : > { %500 = vpow2.f32 %v239_v12 }
  0xbc   : > { %v499_v14 = vpop.eup %498 }
  0xbd   : > { %v241_v15 = vsel %vm228_vm0, %v499_v14, 0.0 }
  0xbe   : > { %242 = vadd.xlane.f32.xlu0 %v241_v15 }
  0xc0   : > { %v501_v18 = vpop.eup %500 }
  0xc1   : > { %v244_v20 = vsel %vm228_vm0, %v501_v18, 0.0 }
  0xc2   : > { %252 = vadd.xlane.f32.xlu0 %v251_v19  ;;  %245 = vadd.xlane.f32.xlu1 %v244_v20 }
  0xc6   : > { %255 = vadd.xlane.f32.xlu0 %v254_v22 }
  0xca   : > { %272 = vadd.xlane.f32.xlu0 %v271_v24 }
  0xce   : > { %275 = vadd.xlane.f32.xlu0 %v274_v26 }
 0x14b   : > { %v243_v28 = vpop.xlane.xlu0 %242 }
 0x14c   : > { %502 = vlog2.f32 %v243_v28 }
 0x14f   : > { %v246_v29 = vpop.xlane.xlu1 %245  ;;  %v253_v30 = vpop.xlane.xlu0 %252 }
 0x150   : > { %504 = vlog2.f32 %v246_v29 }
 0x153   : > { %v256_v31 = vpop.xlane.xlu0 %255 }
 0x156   : > { %v503_v32 = vpop.eup %502 }
 0x157   : > { %v248_v33 = vmul.f32 0.6931472, %v503_v32  ;;  %v273_v34 = vpop.xlane.xlu0 %272 }
 0x159   : > { %v277_v36 = vmul.f32 32.0, %v248_v33  ;;  %v283_v42 = vsub.f32 %v273_v34, %v248_v33 }
 0x15a   : > { %v505_v37 = vpop.eup %504 }
 0x15b   : > { %v250_v39 = vmul.f32 0.6931472, %v505_v37  ;;  %v279_v40 = vsub.f32 %v253_v30, %v277_v36  ;;  %v276_v43 = vpop.xlane.xlu0 %275  ;;  %v285_v50 = vmul.f32 0.8967742, %v283_v42 }
 0x15d   : > { %v281_v44 = vmul.f32 0.0032258064, %v279_v40  ;;  %v278_v45 = vmul.f32 32.0, %v250_v39  ;;  %v284_v46 = vsub.f32 %v276_v43, %v250_v39 }
 0x15f   : > { %v280_v49 = vsub.f32 %v256_v31, %v278_v45  ;;  %v287_v52 = vadd.f32 %v285_v50, %v281_v44  ;;  %v286_v53 = vmul.f32 0.8967742, %v284_v46 }
 0x161   : > { %v282_v51 = vmul.f32 0.0032258064, %v280_v49  ;;  %v299_v55 = vsel %vm297_vm4, %v287_v52, 0.0 }
 0x163   : > { %v288_v54 = vadd.f32 %v286_v53, %v282_v51 }
 0x165   : > { %v300_v56 = vsel %vm298_vm5, %v288_v54, 0.0 }
 0x166   : > { %v302_v57 = vadd.f32 %v300_v56, %v299_v55 }
 0x168   : > { %v303_v58 = vrot.slane %v302_v57, 4 }
 0x16a   : > { %v304_v59 = vadd.f32 %v303_v58, %v302_v57 }
 0x16c   : > { %v305_v60 = vrot.slane %v304_v59, 2 }
 0x16e   : > { %v306_v61 = vadd.f32 %v305_v60, %v304_v59 }
 0x170   : > { %v307_v62 = vrot.slane %v306_v61, 1 }
 0x172   : > { %v308_v0 = vadd.f32 %v307_v62, %v306_v61 }
 0x174   : > { %v309_v1 = vadd.f32 %v308_v0, %v301_v63 }
 0x176   : > { %311 = vst.msk [vmem:[#allocation2] sm:$0x1] %vm224_vm3, %v309_v1 }
 0x17d   : > { %v315_v3 = vld [vmem:[#allocation2] sm:$0x1] }
 0x17e   : > { %v316_v4 = vmul.f32 -0.0625, %v315_v3 }
 0x180   : > { %v324_v5 = vrot.slane %v316_v4, %v323_v2 }
 0x182   : > { %326 = vperm.xlu0 %497, %v324_v5  }
 0x201   : > { %v327_v6 = vpop.permute.xlu0 %326 }
 0x202   : > { %v329_v7 = vsel %vm319_vm8, %v327_v6, 0.0 }
 0x203   : > { %330 = vst [vmem:[%s195_s7] sm:$0xff] %v329_v7 }
 0x204   : > { %519 = shalt.err (!%p516_p6)
}
 0x205   : > { %s520_s27 = scalar_lea.hbm %s688_s20, 128  ;;  %s524_s30 = scalar_lea.hbm %s737_s2, 256 }
 0x206   : > { %p521_p7 = scmp.ne.s32.totalorder %s688_s20, %s520_s27  ;;  %p525_p11 = scmp.lt.u32.totalorder %s688_s20, %s737_s2 }
 0x207   : > { %p526_p12 = scmp.lt.u32.totalorder %s524_s30, %s520_s27  ;;  %p528_p0 = scmp.lt.u32.totalorder %s520_s27, %s688_s20 }
 0x208   : > { %p522_p9 = pnand %p521_p7, %p644_p4 }
 0x209   : > { %p527_p13 = por %p526_p12, %p525_p11 }
 0x20a   : > { %p523_p10 = pneg %p522_p9 }
 0x20b   : > { %p529_p1 = por %p528_p0, %p527_p13 }
 0x20d   : > { %p530_p2 = pnand %p529_p1, %p523_p10 }
 0x20f   : > { %533 = shalt.err (!%p530_p2)
}
 0x210   : > { %439 = dma.vmem_to_hbm [thread:$0]  (%p644_p4), %s690_s8, 128, %s688_s20, %s332_s23  }
 0x211 PF: > { %p445_p3 = scmp.ge.s32.totalorder %s584_s14, 2  ;;  %s357_s5 = sand.u32 1, %s564_s9  }
 0x212   : > { %s358_s6 = scalar_lea.sflag [#allocation4], %s357_s5 }
 0x213   : > { %p442_p5 = pnand %p445_p3, %p651_p8 }
 0x215   : > { %559 = dma.done.wait (!%p442_p5), %s358_s6, 128  }
 0x216   : > { %561 = vsyncadd (!%p442_p5), %s358_s6, 4294967168  ;;  %s15_s14 = sadd.s32 1, %s584_s14   ;;  %s740_s9 = smov %s568_s10 }
 0x217   : > { %p12_p6 = scmp.ge.s32.totalorder %s15_s14, 4   ;;  %s741_s10 = smov %s572_s11 }
 0x218   : > { %s742_s11 = smov %s657_s22  ;;  %s743_s12 = smov %s580_s13 }
 0x219   : > { %s744_s13 = smov %s746_s17  ;;  %14 = sbr.rel (!%p12_p6) target bundleno = 4 (0x4), region = 74 }
 0x220   :  { %363 = vsyncpa [#allocation4], 1 }
 0x221   :  { %365 = vsyncpa [#allocation4 + $0x1], 1 }

</bundles_post_ra>
